<compile_context>
chip_gen: v5e
topology: v5e:2x2
jax: 0.10.0
libtpu: 0.0.40
codegen_flags: <defaults>
</compile_context>

<pallas_src>
import functools

import jax
import jax.numpy as jnp
from jax.experimental import pallas as pl
from jax.experimental.pallas import tpu as pltpu

_LANE = 128      # lane width  (last dim)
_SUBLANE = 8     # sublane width (second-to-last dim)


def _round_up(x, m):
    return ((x + m - 1) // m) * m


# ----------------------------------------------------------------------------
# Fused kernel: h = sigmoid(... sigmoid(sigmoid(x @ W1 + b1) @ W2 + b2) ... )
# ----------------------------------------------------------------------------
def _make_encoder_kernel(num_layers):
    def kernel(x_ref, *refs):
        # refs = (w1, b1, w2, b2, ..., wN, bN, out)
        o_ref = refs[-1]
        h = x_ref[...]                                    # (bm, in_dim) f32
        for l in range(num_layers):                       # unrolled at trace time
            w_ref = refs[2 * l]                           # (K, d_out_pad)  bf16
            b_ref = refs[2 * l + 1]                       # (1, d_out_pad)  f32
            z = jnp.dot(h.astype(jnp.bfloat16), w_ref[...],
                        preferred_element_type=jnp.float32)   # bf16 MXU, f32 acc
            z = z + b_ref[...]                            # f32 bias add
            h = jax.nn.sigmoid(z)                         # f32, exp -> EUP slot
        o_ref[...] = h.astype(o_ref.dtype)                # bf16, lane-dense store
    return kernel


def _vmem_limit_bytes(prepared_params, bm, in_dim, out_pad):
    """Resident footprint (default double-buffering) + generous headroom."""
    weight_bytes = 0
    for w_t, b_p in prepared_params:
        weight_bytes += w_t.size * w_t.dtype.itemsize
        weight_bytes += b_p.size * b_p.dtype.itemsize
    x_bytes = bm * in_dim * 4           # f32 input tile
    o_bytes = bm * out_pad * 2          # bf16 output tile
    resident = 2 * (weight_bytes + x_bytes + o_bytes)
    return int(min(max(resident + (8 << 20), 16 << 20), 64 << 20))


def _fused_encoder_call(x_in, prepared_params, bm):
    """One pallas_call over the whole layer stack. x_in: (Bp, in_dim) f32."""
    Bp, in_dim = x_in.shape
    num_layers = len(prepared_params)
    out_pad = prepared_params[-1][0].shape[1]
    grid = (Bp // bm,)                   # Bp is a multiple of bm (full tiles)

    # x block: last dim == full array dim -> no lane padding needed.
    in_specs = [pl.BlockSpec((bm, in_dim), lambda i: (i, 0))]
    flat_inputs = [x_in]
    for w_t, b_p in prepared_params:
        # Constant index_map -> weights/biases stay resident in VMEM across steps.
        in_specs.append(pl.BlockSpec(w_t.shape, lambda i: (0, 0)))
        in_specs.append(pl.BlockSpec(b_p.shape, lambda i: (0, 0)))
        flat_inputs.append(w_t)
        flat_inputs.append(b_p)

    return pl.pallas_call(
        _make_encoder_kernel(num_layers),
        out_shape=jax.ShapeDtypeStruct((Bp, out_pad), jnp.bfloat16),
        grid_spec=pltpu.PrefetchScalarGridSpec(
            num_scalar_prefetch=0,
            grid=grid,
            in_specs=in_specs,
            out_specs=pl.BlockSpec((bm, out_pad), lambda i: (i, 0)),
        ),
        compiler_params=pltpu.CompilerParams(
            dimension_semantics=("parallel",),
            vmem_limit_bytes=_vmem_limit_bytes(prepared_params, bm, in_dim,
                                               out_pad),
        ),
    )(*flat_inputs)


# ----------------------------------------------------------------------------
# Parameter handling
# ----------------------------------------------------------------------------
def init_encoder_params(key, input_dim, hidden_dims, latent_dim):
    """PyTorch-convention params: weight (out, in), bias (out,), U(-1/sqrt(in), ...)."""
    architecture = [input_dim] + list(hidden_dims) + [latent_dim]
    params = []
    for in_dim, out_dim in zip(architecture[:-1], architecture[1:]):
        key, kw, kb = jax.random.split(key, 3)
        bound = 1.0 / jnp.sqrt(jnp.float32(in_dim))
        w = jax.random.uniform(kw, (out_dim, in_dim), jnp.float32, -bound, bound)
        b = jax.random.uniform(kb, (out_dim,), jnp.float32, -bound, bound)
        params.append((w, b))
    return params


def prepare_encoder_params(params):
    """Transpose + pad + cast weights ONCE (outside the hot path).

    Layer 0 weight keeps its K (=input_dim) dim unpadded so x needs no lane
    padding; all output dims (and K dims of later layers) are zero-padded to a
    lane multiple.  Weights are bf16 (MXU-native), biases stay f32.  Padded
    weight ROWS are zero, so the sigmoid(0)=0.5 garbage living in padded
    activation columns contributes nothing downstream.
    """
    prepared = []
    for l, (w, b) in enumerate(params):
        out_dim, in_dim = w.shape
        in_pad = in_dim if l == 0 else _round_up(in_dim, _LANE)
        out_pad = _round_up(out_dim, _LANE)
        w_t = jnp.zeros((in_pad, out_pad), jnp.float32)
        w_t = w_t.at[:in_dim, :out_dim].set(jnp.transpose(w).astype(jnp.float32))
        b_p = jnp.zeros((1, out_pad), jnp.float32)
        b_p = b_p.at[0, :out_dim].set(b.astype(jnp.float32))
        prepared.append((w_t.astype(jnp.bfloat16), b_p))
    return tuple(prepared)


# ----------------------------------------------------------------------------
# Forward pass
# ----------------------------------------------------------------------------
@functools.partial(jax.jit, static_argnames=("latent_dim",))
def encoder_forward(x, prepared_params, latent_dim):
    B, in_dim = x.shape

    # Batch tiling: tiny batches -> one full-batch grid step; otherwise at
    # least 2 grid steps (v7x has 2 TensorCores and "parallel" shards grid
    # steps across them), capped at 1024-row tiles. Bp is rounded up to a
    # multiple of bm so every grid step is a full, unmasked tile.
    Bp0 = _round_up(max(B, _SUBLANE), _SUBLANE)
    if Bp0 < 16:
        bm = Bp0
    else:
        bm = min(_round_up(-(-Bp0 // 2), _SUBLANE), 1024)
    Bp = _round_up(Bp0, bm)

    x_in = x.astype(jnp.float32)
    if Bp != B:
        x_in = jnp.zeros((Bp, in_dim), jnp.float32).at[:B, :].set(x_in)

    out = _fused_encoder_call(x_in, prepared_params, bm)   # (Bp, out_pad) bf16
    return out[:B, :latent_dim].astype(jnp.float32)


# ----------------------------------------------------------------------------
if __name__ == "__main__":
    key = jax.random.PRNGKey(0)

    # Small shapes consistent with the module: input_dim=32, hidden=[16, 12], latent=8
    input_dim, hidden_dims, latent_dim = 32, [16, 12], 8
    batch = 8

    kx, kp = jax.random.split(key)
    x = jax.random.normal(kx, (batch, input_dim), jnp.float32)
    params = init_encoder_params(kp, input_dim, hidden_dims, latent_dim)
    prepared = prepare_encoder_params(params)   # transpose + pad + bf16, once

    out = encoder_forward(x, prepared, latent_dim)
    jax.block_until_ready(out)

    # Pure-JAX f32 reference of the Linear+Sigmoid stack (PyTorch semantics).
    ref = x
    for w, b in params:
        ref = jax.nn.sigmoid(ref @ w.T + b)

    assert out.shape == (batch, latent_dim)
    # bf16 MXU operands + bf16 output store -> relaxed tolerance.
    assert jnp.allclose(out, ref, atol=2e-2, rtol=2e-2), float(
        jnp.max(jnp.abs(out - ref)))

    print("KERNEL_OK")
</pallas_src>

<mosaic_0001>
module attributes {stable_mosaic.version = 11 : i64} {
  func.func @kernel(%arg0: i32, %arg1: memref<8x32xf32, #tpu.memory_space<vmem>>, %arg2: memref<32x128xbf16, #tpu.memory_space<vmem>>, %arg3: memref<1x128xf32, #tpu.memory_space<vmem>>, %arg4: memref<128x128xbf16, #tpu.memory_space<vmem>>, %arg5: memref<1x128xf32, #tpu.memory_space<vmem>>, %arg6: memref<128x128xbf16, #tpu.memory_space<vmem>>, %arg7: memref<1x128xf32, #tpu.memory_space<vmem>>, %arg8: memref<8x128xbf16, #tpu.memory_space<vmem>>) attributes {dimension_semantics = [#tpu.dimension_semantics<parallel>], iteration_bounds = array<i64: 1>, scalar_prefetch = 0 : i64, scratch_operands = 0 : i64, tpu.core_type = #tpu.core_type<tc>, window_params = [{transform_indices = @transform_0, window_bounds = array<i64: 8, 32>}, {pipeline_mode = #tpu.pipeline_mode<synchronous>, transform_indices = @transform_1, window_bounds = array<i64: 32, 128>}, {pipeline_mode = #tpu.pipeline_mode<synchronous>, transform_indices = @transform_2, window_bounds = array<i64: 1, 128>}, {pipeline_mode = #tpu.pipeline_mode<synchronous>, transform_indices = @transform_3, window_bounds = array<i64: 128, 128>}, {pipeline_mode = #tpu.pipeline_mode<synchronous>, transform_indices = @transform_4, window_bounds = array<i64: 1, 128>}, {pipeline_mode = #tpu.pipeline_mode<synchronous>, transform_indices = @transform_5, window_bounds = array<i64: 128, 128>}, {pipeline_mode = #tpu.pipeline_mode<synchronous>, transform_indices = @transform_6, window_bounds = array<i64: 1, 128>}, {transform_indices = @transform_7, window_bounds = array<i64: 8, 128>}]} {
    %c0 = arith.constant 0 : index
    %c0_0 = arith.constant 0 : index
    %0 = vector.load %arg1[%c0, %c0_0] : memref<8x32xf32, #tpu.memory_space<vmem>>, vector<8x32xf32>
    %1 = arith.truncf %0 : vector<8x32xf32> to vector<8x32xbf16>
    %c0_1 = arith.constant 0 : index
    %c0_2 = arith.constant 0 : index
    %2 = vector.load %arg2[%c0_1, %c0_2] : memref<32x128xbf16, #tpu.memory_space<vmem>>, vector<32x128xbf16>
    %cst = arith.constant dense<0.000000e+00> : vector<8x128xf32>
    %3 = tpu.matmul %1, %2, %cst {dimension_numbers = #tpu.dot_dimension_numbers<[1], [0], [0], [1], [0, 0, 1, 1], [], []>} : vector<8x32xbf16>, vector<32x128xbf16>, vector<8x128xf32> -> vector<8x128xf32>
    %c0_3 = arith.constant 0 : index
    %c0_4 = arith.constant 0 : index
    %4 = vector.load %arg3[%c0_3, %c0_4] : memref<1x128xf32, #tpu.memory_space<vmem>>, vector<1x128xf32>
    %5 = vector.broadcast %4 : vector<1x128xf32> to vector<8x128xf32>
    %6 = arith.addf %3, %5 : vector<8x128xf32>
    %7 = arith.negf %6 : vector<8x128xf32>
    %8 = math.exp %7 : vector<8x128xf32>
    %cst_5 = arith.constant 1.000000e+00 : f32
    %9 = vector.broadcast %cst_5 : f32 to vector<8x128xf32>
    %10 = arith.addf %9, %8 : vector<8x128xf32>
    %11 = arith.divf %9, %10 : vector<8x128xf32>
    %12 = arith.truncf %11 : vector<8x128xf32> to vector<8x128xbf16>
    %c0_6 = arith.constant 0 : index
    %c0_7 = arith.constant 0 : index
    %13 = vector.load %arg4[%c0_6, %c0_7] : memref<128x128xbf16, #tpu.memory_space<vmem>>, vector<128x128xbf16>
    %cst_8 = arith.constant dense<0.000000e+00> : vector<8x128xf32>
    %14 = tpu.matmul %12, %13, %cst_8 {dimension_numbers = #tpu.dot_dimension_numbers<[1], [0], [0], [1], [0, 0, 1, 1], [], []>} : vector<8x128xbf16>, vector<128x128xbf16>, vector<8x128xf32> -> vector<8x128xf32>
    %c0_9 = arith.constant 0 : index
    %c0_10 = arith.constant 0 : index
    %15 = vector.load %arg5[%c0_9, %c0_10] : memref<1x128xf32, #tpu.memory_space<vmem>>, vector<1x128xf32>
    %16 = vector.broadcast %15 : vector<1x128xf32> to vector<8x128xf32>
    %17 = arith.addf %14, %16 : vector<8x128xf32>
    %18 = arith.negf %17 : vector<8x128xf32>
    %19 = math.exp %18 : vector<8x128xf32>
    %cst_11 = arith.constant 1.000000e+00 : f32
    %20 = vector.broadcast %cst_11 : f32 to vector<8x128xf32>
    %21 = arith.addf %20, %19 : vector<8x128xf32>
    %22 = arith.divf %20, %21 : vector<8x128xf32>
    %23 = arith.truncf %22 : vector<8x128xf32> to vector<8x128xbf16>
    %c0_12 = arith.constant 0 : index
    %c0_13 = arith.constant 0 : index
    %24 = vector.load %arg6[%c0_12, %c0_13] : memref<128x128xbf16, #tpu.memory_space<vmem>>, vector<128x128xbf16>
    %cst_14 = arith.constant dense<0.000000e+00> : vector<8x128xf32>
    %25 = tpu.matmul %23, %24, %cst_14 {dimension_numbers = #tpu.dot_dimension_numbers<[1], [0], [0], [1], [0, 0, 1, 1], [], []>} : vector<8x128xbf16>, vector<128x128xbf16>, vector<8x128xf32> -> vector<8x128xf32>
    %c0_15 = arith.constant 0 : index
    %c0_16 = arith.constant 0 : index
    %26 = vector.load %arg7[%c0_15, %c0_16] : memref<1x128xf32, #tpu.memory_space<vmem>>, vector<1x128xf32>
    %27 = vector.broadcast %26 : vector<1x128xf32> to vector<8x128xf32>
    %28 = arith.addf %25, %27 : vector<8x128xf32>
    %29 = arith.negf %28 : vector<8x128xf32>
    %30 = math.exp %29 : vector<8x128xf32>
    %cst_17 = arith.constant 1.000000e+00 : f32
    %31 = vector.broadcast %cst_17 : f32 to vector<8x128xf32>
    %32 = arith.addf %31, %30 : vector<8x128xf32>
    %33 = arith.divf %31, %32 : vector<8x128xf32>
    %34 = arith.truncf %33 : vector<8x128xf32> to vector<8x128xbf16>
    %c0_18 = arith.constant 0 : index
    %c0_19 = arith.constant 0 : index
    %35 = vector.load %arg8[%c0_18, %c0_19] : memref<8x128xbf16, #tpu.memory_space<vmem>>, vector<8x128xbf16>
    tpu.vector_store %arg8[%c0_18, %c0_19], %34 {strides = array<i32>} : memref<8x128xbf16, #tpu.memory_space<vmem>>, vector<8x128xbf16>,
    return
  }
  func.func @transform_0(%arg0: i32) -> (i32, i32) {
    %c0_i32 = arith.constant 0 : i32
    %c0_i32_0 = arith.constant 0 : i32
    return %arg0, %c0_i32 : i32, i32
  }
  func.func @transform_1(%arg0: i32) -> (i32, i32) {
    %c0_i32 = arith.constant 0 : i32
    %c0_i32_0 = arith.constant 0 : i32
    %c0_i32_1 = arith.constant 0 : i32
    return %c0_i32, %c0_i32_0 : i32, i32
  }
  func.func @transform_2(%arg0: i32) -> (i32, i32) {
    %c0_i32 = arith.constant 0 : i32
    %c0_i32_0 = arith.constant 0 : i32
    %c0_i32_1 = arith.constant 0 : i32
    return %c0_i32, %c0_i32_0 : i32, i32
  }
  func.func @transform_3(%arg0: i32) -> (i32, i32) {
    %c0_i32 = arith.constant 0 : i32
    %c0_i32_0 = arith.constant 0 : i32
    %c0_i32_1 = arith.constant 0 : i32
    return %c0_i32, %c0_i32_0 : i32, i32
  }
  func.func @transform_4(%arg0: i32) -> (i32, i32) {
    %c0_i32 = arith.constant 0 : i32
    %c0_i32_0 = arith.constant 0 : i32
    %c0_i32_1 = arith.constant 0 : i32
    return %c0_i32, %c0_i32_0 : i32, i32
  }
  func.func @transform_5(%arg0: i32) -> (i32, i32) {
    %c0_i32 = arith.constant 0 : i32
    %c0_i32_0 = arith.constant 0 : i32
    %c0_i32_1 = arith.constant 0 : i32
    return %c0_i32, %c0_i32_0 : i32, i32
  }
  func.func @transform_6(%arg0: i32) -> (i32, i32) {
    %c0_i32 = arith.constant 0 : i32
    %c0_i32_0 = arith.constant 0 : i32
    %c0_i32_1 = arith.constant 0 : i32
    return %c0_i32, %c0_i32_0 : i32, i32
  }
  func.func @transform_7(%arg0: i32) -> (i32, i32) {
    %c0_i32 = arith.constant 0 : i32
    %c0_i32_0 = arith.constant 0 : i32
    return %arg0, %c0_i32 : i32, i32
  }
}

</mosaic_0001>

<bundles_post_ra>
// kernel: encoder_forward.1
= control target key start
LH: loop header
LB: loop body
LE: loop exit
PB: predicated region body
PF: predicated region fallthrough
CT: control target
= control target key end

     0   :  { %12 = vsyncpa [#allocation3], 0  ;;  %s644_s0 = inlined_call_operand.hbm [shape: f32[8,32], index: 0, kind: input, shape index: {}]   ;;  %s645_s1 = inlined_call_operand.hbm [shape: bf16[32,128], index: 1, kind: input, shape index: {}]   ;;  %s646_s2 = inlined_call_operand.vmem [shape: f32[1,128], index: 2, kind: input, shape index: {}]   ;;  %s647_s3 = inlined_call_operand.hbm [shape: bf16[128,128], index: 3, kind: input, shape index: {}]   ;;  %s648_s4 = inlined_call_operand.vmem [shape: f32[1,128], index: 4, kind: input, shape index: {}]   ;;  %s649_s5 = inlined_call_operand.hbm [shape: bf16[128,128], index: 5, kind: input, shape index: {}]   ;;  %s650_s6 = inlined_call_operand.vmem [shape: f32[1,128], index: 6, kind: input, shape index: {}]   ;;  %s651_s7 = inlined_call_operand.vmem [shape: bf16[8,128], index: 7, kind: output, shape index: {}]  }
   0x1   :  { %13 = vsyncpa [#allocation5], 0  ;;  %s30_s26 = sshll.u32 %s645_s1, 4  ;;  %s31_s26 = int_to_ptr.hbm [resolvable:$true] %s30_s26 }
   0x2   :  { %14 = vsyncpa [#allocation8], 0  ;;  %s574_s27 = smov [#allocation4]   ;;  %s20_s8 = sshll.u32 %s644_s0, 4  ;;  %s21_s8 = int_to_ptr.hbm [resolvable:$true] %s20_s8 }
   0x3   :  { %s32_s28 = sshll.u32 %s574_s27, 4  ;;  %s575_s9 = smov 64   ;;  %s33_s28 = int_to_ptr.vmem [resolvable:$true] %s32_s28 }
   0x4   :  { %s576_s10 = smov 4   ;;  %s577_s11 = smov [#allocation2]  }
   0x5   :  { %38 = dma.hbm_to_vmem [thread:$0]  %s31_s26, 256, %s33_s28, [#allocation5], %s575_s9, %s575_s9, %s576_s10  }
   0x6   :  { %s22_s12 = sshll.u32 %s577_s11, 4  ;;  %s45_s15 = sshll.u32 %s647_s3, 4  ;;  %s23_s12 = int_to_ptr.vmem [resolvable:$true] %s22_s12  ;;  %s46_s15 = int_to_ptr.hbm [resolvable:$true] %s45_s15 }
   0x7   :  { %25 = dma.hbm_to_vmem [thread:$0]  %s21_s8, 128, %s23_s12, [#allocation3]  }
   0x8   :  { %s60_s17 = sshll.u32 %s649_s5, 4  ;;  %s578_s18 = smov [#allocation6]   ;;  %s61_s17 = int_to_ptr.hbm [resolvable:$true] %s60_s17 }
   0x9   :  { %s47_s19 = sshll.u32 %s578_s18, 4  ;;  %s579_s0 = smov [#allocation7]   ;;  %s48_s19 = int_to_ptr.vmem [resolvable:$true] %s47_s19 }
   0xa   :  { %53 = dma.hbm_to_vmem [thread:$0]  %s46_s15, 1024, %s48_s19, [#allocation5], %s575_s9, %s575_s9, %s576_s10  }
   0xb   :  { %s62_s20 = sshll.u32 %s579_s0, 4  ;;  %s63_s20 = int_to_ptr.vmem [resolvable:$true] %s62_s20 }
   0xc   :  { %68 = dma.hbm_to_vmem [thread:$0]  %s61_s17, 1024, %s63_s20, [#allocation8], %s575_s9, %s575_s9, %s576_s10  }
   0xd   :  { %568 = dma.done.wait [#allocation3], 128  }
   0xe   :  { %569 = vsyncadd [#allocation3], 4294967168 }
   0xf   :  { %570 = dma.done.wait [#allocation5], 1280  }
  0x10   :  { %571 = vsyncadd [#allocation5], 4294966016 }
  0x11   :  { %572 = dma.done.wait [#allocation8], 1024  }
  0x12   :  { %573 = vsyncadd [#allocation8], 4294966272  ;;  %v434_v0 = vld [vmem:[#allocation4 + $0x8] sm:$0xff]  ;;  %v433_v1 = vld [vmem:[#allocation4] sm:$0xff]  ;;  %vm110_vm0 = vcmask 261120  }
  0x13   :  { %120 = vmatpush.bf16.msra.mxu0 %v434_v0  ;;  %v88_v2 = vld [vmem:[#allocation2] sm:$0xff]  ;;  %v442_v4 = vld [vmem:[#allocation6 + $0x38] sm:$0xff]  ;;  %v441_v5 = vld [vmem:[#allocation6 + $0x30] sm:$0xff] }
  0x14   :  { %v89_v3 = vpack.c.bf16 %v88_v2, %v88_v2  ;;  %215 = vmatpush.bf16.msra.mxu1 %v442_v4  ;;  %v440_v6 = vld [vmem:[#allocation6 + $0x28] sm:$0xff]  ;;  %v439_v7 = vld [vmem:[#allocation6 + $0x20] sm:$0xff]  ;;  %v438_v8 = vld [vmem:[#allocation6 + $0x18] sm:$0xff] }
  0x15   :  { %v437_v9 = vld [vmem:[#allocation6 + $0x10] sm:$0xff]  ;;  %v436_v10 = vld [vmem:[#allocation6 + $0x8] sm:$0xff]  ;;  %v435_v11 = vld [vmem:[#allocation6] sm:$0xff] }
  0x16   :  { %v457_v12 = vld [vmem:[%s646_s2] ss:$0 sm:$0xff]  ;;  %v450_v30 = vld [vmem:[#allocation7 + $0x38] sm:$0xff]  ;;  %v449_v31 = vld [vmem:[#allocation7 + $0x30] sm:$0xff] }
  0x17   :  { %121 = vmatpush.bf16.msra.mxu0 %v433_v1  ;;  %316 = vmatpush.bf16.msra.mxu2 %v450_v30  ;;  %v448_v32 = vld [vmem:[#allocation7 + $0x28] sm:$0xff]  ;;  %v447_v33 = vld [vmem:[#allocation7 + $0x20] sm:$0xff]  ;;  %v446_v34 = vld [vmem:[#allocation7 + $0x18] sm:$0xff] }
  0x18   :  { %216 = vmatpush.bf16.msra.mxu1 %v441_v5  ;;  %v445_v35 = vld [vmem:[#allocation7 + $0x10] sm:$0xff]  ;;  %v444_v36 = vld [vmem:[#allocation7 + $0x8] sm:$0xff]  ;;  %v443_v37 = vld [vmem:[#allocation7] sm:$0xff] }
  0x19   :  { %v458_v38 = vld [vmem:[%s648_s4] ss:$0 sm:$0xff] }
  0x1a   :  { %365 = vmatmul.msk.bf16.vlgmr.msra.gmra.mxu0 %vm110_vm0, %v89_v3  ;;  %v459_v56 = vld [vmem:[%s650_s6] ss:$0 sm:$0xff] }
  0x1b   :  { %317 = vmatpush.bf16.msra.mxu2 %v449_v31 }
  0x1c   :  { %217 = vmatpush.bf16.msra.mxu1 %v440_v6 }
  0x1f   :  { %318 = vmatpush.bf16.msra.mxu2 %v448_v32 }
  0x20   :  { %218 = vmatpush.bf16.msra.mxu1 %v439_v7 }
  0x23   :  { %319 = vmatpush.bf16.msra.mxu2 %v447_v33 }
  0x24   :  { %219 = vmatpush.bf16.msra.mxu1 %v438_v8 }
  0x27   :  { %320 = vmatpush.bf16.msra.mxu2 %v446_v34 }
  0x28   :  { %220 = vmatpush.bf16.msra.mxu1 %v437_v9 }
  0x2b   :  { %321 = vmatpush.bf16.msra.mxu2 %v445_v35 }
  0x2c   :  { %221 = vmatpush.bf16.msra.mxu1 %v436_v10 }
  0x2f   :  { %322 = vmatpush.bf16.msra.mxu2 %v444_v36 }
  0x30   :  { %222 = vmatpush.bf16.msra.mxu1 %v435_v11 }
  0x33   :  { %323 = vmatpush.bf16.msra.mxu2 %v443_v37 }
  0x97   :  { %v123_v13 = vpop.f32.mrf.mxu0 }
  0x98   :  { %v124_v14 = vadd.f32 %v457_v12, %v123_v13 }
  0x9a   :  { %v366_v15 = vmul.f32 -1.442695, %v124_v14 }
  0x9c   :  { %460 = vpow2.f32 %v366_v15 }
  0x9f   :  { %v125_v16 = vpop.f32.mrf.mxu0 }
  0xa2   :  { %v461_v17 = vpop.eup %460 }
  0xa3   :  { %v130_v18 = vadd.f32 1.0, %v461_v17 }
  0xa5   :  { %462 = vrcp.f32 %v130_v18  ;;  %v142_v22 = vand.u32 2147483648, %v130_v18  ;;  %v140_v24 = vand.u32 2147483647, %v130_v18  ;;  %vm136_vm2 = vweird.f32 %v130_v18 }
  0xa7   :  { %v143_v26 = vor.u32 1.1754944e-38, %v142_v22  ;;  %vm141_vm4 = vcmp.eq.f32.partialorder %v140_v24, 8.507059e+37 }
  0xab   :  { %v463_v19 = vpop.eup %462 }
  0xac   :  { %v132_v20 = vmul.f32 %v463_v19, %v130_v18  ;;  %vm137_vm1 = vweird.f32 %v463_v19 }
  0xad   :  { %vm138_vm3 = vmor %vm136_vm2, %vm137_vm1 }
  0xae   :  { %v133_v21 = vsub.f32 1.0, %v132_v20 }
  0xb0   :  { %v134_v23 = vmul.f32 %v463_v19, %v133_v21 }
  0xb2   :  { %v135_v25 = vadd.f32 %v463_v19, %v134_v23 }
  0xb4   :  { %v139_v27 = vsel %vm138_vm3, %v463_v19, %v135_v25 }
  0xb5   :  { %v144_v28 = vsel %vm141_vm4, %v143_v26, %v139_v27 }
  0xb6   :  { %v146_v29 = vpack.c.bf16 %v144_v28, %v144_v28 }
  0xb8   :  { %223 = vmatmul.bf16.vlgmr.msra.gmra.mxu1 %v146_v29 }
 0x135   :  { %v224_v39 = vpop.f32.mrf.mxu1 }
 0x136   :  { %v225_v40 = vadd.f32 %v458_v38, %v224_v39 }
 0x138   :  { %v399_v41 = vmul.f32 -1.442695, %v225_v40 }
 0x13a   :  { %464 = vpow2.f32 %v399_v41 }
 0x13d   :  { %v226_v42 = vpop.f32.mrf.mxu1 }
 0x140   :  { %v465_v43 = vpop.eup %464 }
 0x141   :  { %v231_v44 = vadd.f32 1.0, %v465_v43 }
 0x143   :  { %466 = vrcp.f32 %v231_v44  ;;  %v243_v48 = vand.u32 2147483648, %v231_v44  ;;  %v241_v50 = vand.u32 2147483647, %v231_v44  ;;  %vm237_vm6 = vweird.f32 %v231_v44 }
 0x145   :  { %v244_v52 = vor.u32 1.1754944e-38, %v243_v48  ;;  %vm242_vm8 = vcmp.eq.f32.partialorder %v241_v50, 8.507059e+37 }
 0x149   :  { %v467_v45 = vpop.eup %466 }
 0x14a   :  { %v233_v46 = vmul.f32 %v467_v45, %v231_v44  ;;  %vm238_vm5 = vweird.f32 %v467_v45 }
 0x14b   :  { %vm239_vm7 = vmor %vm237_vm6, %vm238_vm5 }
 0x14c   :  { %v234_v47 = vsub.f32 1.0, %v233_v46 }
 0x14e   :  { %v235_v49 = vmul.f32 %v467_v45, %v234_v47 }
 0x150   :  { %v236_v51 = vadd.f32 %v467_v45, %v235_v49 }
 0x152   :  { %v240_v53 = vsel %vm239_vm7, %v467_v45, %v236_v51 }
 0x153   :  { %v245_v54 = vsel %vm242_vm8, %v244_v52, %v240_v53 }
 0x154   :  { %v247_v55 = vpack.c.bf16 %v245_v54, %v245_v54 }
 0x156   :  { %324 = vmatmul.bf16.vlgmr.msra.gmra.mxu2 %v247_v55 }
 0x1d9   :  { %v325_v57 = vpop.f32.mrf.mxu2 }
 0x1da   :  { %v326_v58 = vadd.f32 %v459_v56, %v325_v57 }
 0x1dc   :  { %v432_v59 = vmul.f32 -1.442695, %v326_v58 }
 0x1de   :  { %468 = vpow2.f32 %v432_v59 }
 0x1e1   :  { %v327_v60 = vpop.f32.mrf.mxu2 }
 0x1e4   :  { %v469_v61 = vpop.eup %468 }
 0x1e5   :  { %v332_v62 = vadd.f32 1.0, %v469_v61 }
 0x1e7   :  { %470 = vrcp.f32 %v332_v62  ;;  %v344_v2 = vand.u32 2147483648, %v332_v62  ;;  %v342_v4 = vand.u32 2147483647, %v332_v62  ;;  %vm338_vm10 = vweird.f32 %v332_v62 }
 0x1e9   :  { %v345_v6 = vor.u32 1.1754944e-38, %v344_v2  ;;  %vm343_vm12 = vcmp.eq.f32.partialorder %v342_v4, 8.507059e+37 }
 0x1ed   :  { %v471_v63 = vpop.eup %470 }
 0x1ee   :  { %v334_v0 = vmul.f32 %v471_v63, %v332_v62  ;;  %vm339_vm9 = vweird.f32 %v471_v63 }
 0x1ef   :  { %vm340_vm11 = vmor %vm338_vm10, %vm339_vm9 }
 0x1f0   :  { %v335_v1 = vsub.f32 1.0, %v334_v0 }
 0x1f2   :  { %v336_v3 = vmul.f32 %v471_v63, %v335_v1 }
 0x1f4   :  { %v337_v5 = vadd.f32 %v471_v63, %v336_v3 }
 0x1f6   :  { %v341_v7 = vsel %vm340_vm11, %v471_v63, %v337_v5 }
 0x1f7   :  { %v346_v8 = vsel %vm343_vm12, %v345_v6, %v341_v7 }
 0x1f8   :  { %v348_v9 = vpack.c.bf16 %v346_v8, %v346_v8 }
 0x1fa   :  { %349 = vst [vmem:[%s651_s7] sm:$0xf] %v348_v9 }
 0x1fb   :  { %354 = vsyncpa [#allocation3], 1 }
 0x1fc   :  { %355 = vsyncpa [#allocation5], 1 }
 0x1fd   :  { %356 = vsyncpa [#allocation8], 1 }

</bundles_post_ra>
